<compile_context>
chip_gen: v6e
topology: v6e:2x2x1
jax: 0.10.0
libtpu: 0.0.40
codegen_flags: <defaults>
</compile_context>

<pallas_src>
import functools

import jax
import jax.numpy as jnp
import numpy as np
from jax.experimental import pallas as pl
from jax.experimental.pallas import tpu as pltpu

DROPOUT_P = 0.0      # conf['dropout_ratio'] default
NEG_INF = -1e9       # matches masked_fill(-1000000000.0)


def _apply_dropout(y, seed_ref):
    """Inverted dropout via the on-chip PRNG (only traced when DROPOUT_P > 0).

    Applied to the attention *output*, matching `self.dropout(multiHeadAttention(...))`."""
    pltpu.prng_seed(seed_ref[0] + pl.program_id(0))                 # per-tile seed
    bits = pltpu.bitcast(pltpu.prng_random_bits(y.shape), jnp.uint32)
    u = (bits >> 8).astype(jnp.float32) * (1.0 / (1 << 24))         # uniform [0, 1)
    keep = u >= DROPOUT_P
    return jnp.where(keep, y * (1.0 / (1.0 - DROPOUT_P)), 0.0)


def _attention_body(x_ref, m_ref, wqk_ref, o_ref, seed_ref, *, heads, d):
    bb, n, _ = x_ref.shape
    x = x_ref[...]                       # keep input dtype for MXU operands
    mm_dtype = x.dtype

    # Fused q/k projection: one (bb*n, d) @ (d, 2d) matmul (128 output lanes).
    # The 1/sqrt(d) scale is already folded into the W_q half of the weight.
    qk = jnp.dot(x.reshape(bb * n, d), wqk_ref[...],
                 preferred_element_type=jnp.float32)               # (bb*n, 2d) f32
    q = qk[:, :d].astype(mm_dtype).reshape(bb, n, d)
    k = qk[:, d:].astype(mm_dtype).reshape(bb, n, d)

    mask = m_ref[...] > 0.5              # (bb, 1, n), True = padded / masked-out key
    neg = jnp.float32(NEG_INF)

    if heads == 1:
        s = jnp.einsum("bqd,bkd->bqk", q, k, preferred_element_type=jnp.float32)
        s = jnp.where(mask, neg, s)                        # broadcast over query axis
        s = s - jnp.max(s, axis=-1, keepdims=True)         # f32 softmax math
        p = jnp.exp(s)
        l = jnp.sum(p, axis=-1, keepdims=True)
        # Unnormalized att @ v (v == x); normalize the (n, d) output instead of
        # the (n, n) attention matrix, using the EUP approximate reciprocal.
        y = jnp.einsum("bqk,bkd->bqd", p.astype(mm_dtype), x,
                       preferred_element_type=jnp.float32)
        y = y * pl.reciprocal(l, approx=True)
    else:
        dh = d // heads
        # Head-batched layout (bb, heads, n, dh): score/value matmuls stay plain
        # batched 2-D MXU ops instead of 4-D einsums with per-step transposes.
        q4 = q.reshape(bb, n, heads, dh).transpose(0, 2, 1, 3)
        k4 = k.reshape(bb, n, heads, dh).transpose(0, 2, 1, 3)
        v4 = x.reshape(bb, n, heads, dh).transpose(0, 2, 1, 3)
        s = jnp.einsum("bhqd,bhkd->bhqk", q4, k4, preferred_element_type=jnp.float32)
        s = jnp.where(mask[:, None, :, :], neg, s)
        s = s - jnp.max(s, axis=-1, keepdims=True)
        p = jnp.exp(s)
        l = jnp.sum(p, axis=-1, keepdims=True)
        y = jnp.einsum("bhqk,bhkd->bhqd", p.astype(mm_dtype), v4,
                       preferred_element_type=jnp.float32)
        y = (y * pl.reciprocal(l, approx=True)).transpose(0, 2, 1, 3).reshape(bb, n, d)

    if DROPOUT_P > 0.0:
        y = _apply_dropout(y, seed_ref)

    o_ref[...] = y.astype(o_ref.dtype)


def _make_kernel(heads, d):
    if DROPOUT_P > 0.0:
        def kernel(seed_ref, x_ref, m_ref, wqk_ref, o_ref):
            _attention_body(x_ref, m_ref, wqk_ref, o_ref, seed_ref, heads=heads, d=d)
    else:
        def kernel(x_ref, m_ref, wqk_ref, o_ref):
            _attention_body(x_ref, m_ref, wqk_ref, o_ref, None, heads=heads, d=d)
    return kernel


def _vmem_limit_bytes():
    """Per-generation scoped-VMEM request: v5e/v6e (128 MiB phys) -> 64 MiB,
    v7x (64 MiB per TensorCore) -> 32 MiB."""
    try:
        cap = int(pltpu.get_tpu_info().vmem_capacity_bytes)
    except Exception:                     # conservative fallback (v7x per-TC size)
        cap = 64 << 20
    return min(cap // 2, 64 << 20)


def _pick_block_b(B, N, d, heads, itemsize, vmem_limit):
    """Largest batch tile whose double-buffered I/O + f32 intermediates fit."""
    io = 2 * 2 * N * d * itemsize + 2 * 8 * N * 4         # x & out (x2 bufs), padded mask
    inter = 12 * N * d + 2 * N * d * itemsize + (4 + itemsize) * heads * N * N
    item_bytes = io + inter
    budget = int(vmem_limit * 0.7)                         # headroom for weights / temps
    block_b = max(1, min(B, budget // max(1, item_bytes)))
    if B >= 2:
        # Keep >= 2 grid steps: enables pipelining overlap and lets
        # dimension_semantics=("parallel",) shard across v7x's 2 TensorCores.
        block_b = min(block_b, -(-B // 2))
    return int(block_b)


@functools.partial(jax.jit, static_argnames=("heads", "block_b"))
def self_attention(x, mask, w_q, w_k, seed=None, *, heads=1, block_b=None):
    """x: [bs, N_bs, N_max, d] ; mask: [bs, N_bs, 1, N_max] bool (True = pad).

    w_q / w_k: [d, d] right-multiply matrices (i.e. torch Linear `weight.T`)."""
    bs, N_bs, N_max, d = x.shape
    assert mask.shape == (bs, N_bs, 1, N_max)
    assert d % heads == 0
    B = bs * N_bs

    vmem_limit = _vmem_limit_bytes()
    if block_b is None:
        block_b = _pick_block_b(B, N_max, d, heads,
                                jnp.dtype(x.dtype).itemsize, vmem_limit)

    x2 = x.reshape(B, N_max, d)
    m2 = mask.reshape(B, 1, N_max).astype(jnp.float32)
    # Fuse W_q (with 1/sqrt(d) folded in) and W_k into one resident (d, 2d) weight.
    scale = float(d) ** -0.5
    w_qk = jnp.concatenate([w_q * scale, w_k], axis=1).astype(x.dtype)

    in_specs = [
        pl.BlockSpec((block_b, N_max, d), lambda i: (i, 0, 0)),   # x: streamed per tile
        pl.BlockSpec((block_b, 1, N_max), lambda i: (i, 0, 0)),   # mask: streamed per tile
        pl.BlockSpec((d, 2 * d), lambda i: (0, 0)),               # fused W_qk: VMEM-resident
    ]
    args = [x2, m2, w_qk]
    if DROPOUT_P > 0.0:
        in_specs = [pl.BlockSpec(memory_space=pltpu.MemorySpace.SMEM)] + in_specs
        args = [jnp.asarray([0 if seed is None else seed], jnp.int32)] + args

    # NOTE: when B % block_b != 0 the last tile also runs softmax over padded
    # out-of-range rows; that work is discarded on writeback (benign).
    out = pl.pallas_call(
        _make_kernel(heads, d),
        out_shape=jax.ShapeDtypeStruct((B, N_max, d), x.dtype),
        grid=(pl.cdiv(B, block_b),),
        in_specs=in_specs,
        out_specs=pl.BlockSpec((block_b, N_max, d), lambda i: (i, 0, 0)),
        compiler_params=pltpu.CompilerParams(
            dimension_semantics=("parallel",),
            vmem_limit_bytes=vmem_limit),
    )(*args)
    return out.reshape(bs, N_bs, N_max, d)


if __name__ == "__main__":
    key = jax.random.PRNGKey(0)
    kx, kq, kk, kl = jax.random.split(key, 4)

    # Module defaults: dim=64, n_head=1, dropout_ratio=0. Small demo shapes.
    bs, N_bs, heads, N_max, d = 2, 4, 1, 8, 64

    x = jax.random.normal(kx, (bs, N_bs, N_max, d), dtype=jnp.float32)

    # Deterministic Linear(d, d, bias=False) weights, stored right-multiply (W.T).
    w_q = jax.random.normal(kq, (d, d), dtype=jnp.float32) * (1.0 / np.sqrt(d))
    w_k = jax.random.normal(kk, (d, d), dtype=jnp.float32) * (1.0 / np.sqrt(d))

    # Padding mask: True = masked-out key position (as consumed by masked_fill).
    lengths = jax.random.randint(kl, (bs, N_bs, 1, 1), minval=3, maxval=N_max + 1)
    mask = jnp.arange(N_max).reshape(1, 1, 1, N_max) >= lengths   # (bs, N_bs, 1, N_max)

    # Auto-picked block_b (VMEM-aware, >=2 grid steps) -> 2 pipelined tiles here.
    y = self_attention(x, mask, w_q, w_k, heads=heads)
    y = jax.block_until_ready(y)

    # Pure-JAX reference mirroring the PyTorch module (dropout p=0 => identity).
    def ref_attention(x, mask, w_q, w_k, heads):
        bs, N_bs, N_max, d = x.shape
        q = jnp.einsum("abnd,de->abne", x, w_q)
        k = jnp.einsum("abnd,de->abne", x, w_k)
        dh = d // heads
        q = q.reshape(bs, N_bs, N_max, heads, dh).transpose(0, 1, 3, 2, 4)
        k = k.reshape(bs, N_bs, N_max, heads, dh).transpose(0, 1, 3, 2, 4)
        v = x.reshape(bs, N_bs, N_max, heads, dh).transpose(0, 1, 3, 2, 4)
        A = jnp.einsum("abhnd,abhmd->abhnm", q * (d ** -0.5), k)
        A = jnp.where(mask[:, :, None, :, :], NEG_INF, A)
        att = jax.nn.softmax(A, axis=-1)
        y = jnp.einsum("abhnm,abhmd->abhnd", att, v)
        return y.transpose(0, 1, 3, 2, 4).reshape(bs, N_bs, N_max, d)

    ref = ref_attention(x, mask, w_q, w_k, heads)
    # Tolerance covers the EUP approximate-reciprocal softmax normalization.
    np.testing.assert_allclose(np.asarray(y), np.asarray(ref), rtol=2e-3, atol=2e-3)

    print("KERNEL_OK")
</pallas_src>

<mosaic_0001>
module attributes {stable_mosaic.version = 11 : i64} {
  func.func @kernel(%arg0: i32, %arg1: memref<4x8x64xf32, #tpu.memory_space<vmem>>, %arg2: memref<4x1x8xf32, #tpu.memory_space<vmem>>, %arg3: memref<64x128xf32, #tpu.memory_space<vmem>>, %arg4: memref<4x8x64xf32, #tpu.memory_space<vmem>>) attributes {dimension_semantics = [#tpu.dimension_semantics<parallel>], iteration_bounds = array<i64: 2>, scalar_prefetch = 0 : i64, scratch_operands = 0 : i64, tpu.core_type = #tpu.core_type<tc>, window_params = [{transform_indices = @transform_0, window_bounds = array<i64: 4, 8, 64>}, {transform_indices = @transform_1, window_bounds = array<i64: 4, 1, 8>}, {pipeline_mode = #tpu.pipeline_mode<synchronous>, transform_indices = @transform_2, window_bounds = array<i64: 64, 128>}, {transform_indices = @transform_3, window_bounds = array<i64: 4, 8, 64>}]} {
    %c0 = arith.constant 0 : index
    %c0_0 = arith.constant 0 : index
    %c0_1 = arith.constant 0 : index
    %0 = vector.load %arg1[%c0, %c0_0, %c0_1] : memref<4x8x64xf32, #tpu.memory_space<vmem>>, vector<4x8x64xf32>
    %1 = vector.shape_cast %0 : vector<4x8x64xf32> to vector<32x64xf32>
    %c0_2 = arith.constant 0 : index
    %c0_3 = arith.constant 0 : index
    %2 = vector.load %arg3[%c0_2, %c0_3] : memref<64x128xf32, #tpu.memory_space<vmem>>, vector<64x128xf32>
    %cst = arith.constant dense<0.000000e+00> : vector<32x128xf32>
    %3 = tpu.matmul %1, %2, %cst {dimension_numbers = #tpu.dot_dimension_numbers<[1], [0], [0], [1], [0, 0, 1, 1], [], []>} : vector<32x64xf32>, vector<64x128xf32>, vector<32x128xf32> -> vector<32x128xf32>
    %4 = vector.extract_strided_slice %3 {offsets = [0, 0], sizes = [32, 64], strides = [1, 1]} : vector<32x128xf32> to vector<32x64xf32>
    %5 = vector.shape_cast %4 : vector<32x64xf32> to vector<4x8x64xf32>
    %6 = vector.extract_strided_slice %3 {offsets = [0, 64], sizes = [32, 64], strides = [1, 1]} : vector<32x128xf32> to vector<32x64xf32>
    %7 = vector.shape_cast %6 : vector<32x64xf32> to vector<4x8x64xf32>
    %c0_4 = arith.constant 0 : index
    %c0_5 = arith.constant 0 : index
    %c0_6 = arith.constant 0 : index
    %8 = vector.load %arg2[%c0_4, %c0_5, %c0_6] : memref<4x1x8xf32, #tpu.memory_space<vmem>>, vector<4x1x8xf32>
    %cst_7 = arith.constant 5.000000e-01 : f32
    %9 = vector.broadcast %cst_7 : f32 to vector<4x1x8xf32>
    %10 = arith.cmpf ogt, %8, %9 : vector<4x1x8xf32>
    "tpu.trace_start"() <{level = 10 : i32, message = "bqd,bkd->bqk"}> : () -> ()
    %cst_8 = arith.constant dense<0.000000e+00> : vector<4x8x8xf32>
    %11 = tpu.matmul %5, %7, %cst_8 {dimension_numbers = #tpu.dot_dimension_numbers<[2], [2], [1], [1], [0, 0, 0, 1, 1, 1], [0], [0]>} : vector<4x8x64xf32>, vector<4x8x64xf32>, vector<4x8x8xf32> -> vector<4x8x8xf32>
    %cst_9 = arith.constant -1.000000e+09 : f32
    "tpu.trace_stop"() : () -> ()
    %12 = vector.shape_cast %10 : vector<4x1x8xi1> to vector<4x1x8xi1>
    %13 = vector.broadcast %12 : vector<4x1x8xi1> to vector<4x8x8xi1>
    %14 = vector.broadcast %cst_9 : f32 to vector<4x8x8xf32>
    %15 = arith.select %13, %14, %11 : vector<4x8x8xi1>, vector<4x8x8xf32>
    %cst_10 = arith.constant dense<0xFF800000> : vector<4x8xf32>
    %16 = vector.multi_reduction <maximumf>, %15, %cst_10 [2] : vector<4x8x8xf32> to vector<4x8xf32>
    %17 = vector.shape_cast %16 : vector<4x8xf32> to vector<4x8x1xf32>
    %18 = vector.broadcast %17 : vector<4x8x1xf32> to vector<4x8x8xf32>
    %19 = arith.subf %15, %18 : vector<4x8x8xf32>
    %20 = math.exp %19 : vector<4x8x8xf32>
    %cst_11 = arith.constant dense<0.000000e+00> : vector<4x8xf32>
    %21 = vector.multi_reduction <add>, %20, %cst_11 [2] : vector<4x8x8xf32> to vector<4x8xf32>
    %22 = vector.shape_cast %21 : vector<4x8xf32> to vector<4x8x1xf32>
    "tpu.trace_start"() <{level = 10 : i32, message = "bqk,bkd->bqd"}> : () -> ()
    %cst_12 = arith.constant dense<0.000000e+00> : vector<4x8x64xf32>
    %23 = tpu.matmul %20, %0, %cst_12 {dimension_numbers = #tpu.dot_dimension_numbers<[2], [1], [1], [2], [0, 0, 0, 1, 1, 2], [0], [0]>} : vector<4x8x8xf32>, vector<4x8x64xf32>, vector<4x8x64xf32> -> vector<4x8x64xf32>
    "tpu.trace_stop"() : () -> ()
    %24 = tpu.reciprocal %22 {approx = true} : vector<4x8x1xf32> -> vector<4x8x1xf32>
    %25 = vector.broadcast %24 : vector<4x8x1xf32> to vector<4x8x64xf32>
    %26 = arith.mulf %23, %25 : vector<4x8x64xf32>
    %c0_13 = arith.constant 0 : index
    %c0_14 = arith.constant 0 : index
    %c0_15 = arith.constant 0 : index
    %27 = vector.load %arg4[%c0_13, %c0_14, %c0_15] : memref<4x8x64xf32, #tpu.memory_space<vmem>>, vector<4x8x64xf32>
    tpu.vector_store %arg4[%c0_13, %c0_14, %c0_15], %26 {strides = array<i32>} : memref<4x8x64xf32, #tpu.memory_space<vmem>>, vector<4x8x64xf32>,
    return
  }
  func.func @transform_0(%arg0: i32) -> (i32, i32, i32) {
    %c0_i32 = arith.constant 0 : i32
    %c0_i32_0 = arith.constant 0 : i32
    %c0_i32_1 = arith.constant 0 : i32
    return %arg0, %c0_i32, %c0_i32_0 : i32, i32, i32
  }
  func.func @transform_1(%arg0: i32) -> (i32, i32, i32) {
    %c0_i32 = arith.constant 0 : i32
    %c0_i32_0 = arith.constant 0 : i32
    %c0_i32_1 = arith.constant 0 : i32
    return %arg0, %c0_i32, %c0_i32_0 : i32, i32, i32
  }
  func.func @transform_2(%arg0: i32) -> (i32, i32) {
    %c0_i32 = arith.constant 0 : i32
    %c0_i32_0 = arith.constant 0 : i32
    %c0_i32_1 = arith.constant 0 : i32
    return %c0_i32, %c0_i32_0 : i32, i32
  }
  func.func @transform_3(%arg0: i32) -> (i32, i32, i32) {
    %c0_i32 = arith.constant 0 : i32
    %c0_i32_0 = arith.constant 0 : i32
    %c0_i32_1 = arith.constant 0 : i32
    return %arg0, %c0_i32, %c0_i32_0 : i32, i32, i32
  }
}

</mosaic_0001>

<bundles_post_ra>
// kernel: self_attention.1
= control target key start
LH: loop header
LB: loop body
LE: loop exit
PB: predicated region body
PF: predicated region fallthrough
CT: control target
= control target key end

     0   :  { %8 = vsyncpa [#allocation3], 0  ;;  %s1537_s0 = inlined_call_operand.vmem [shape: f32[8,8,64], index: 0, kind: input, shape index: {}]   ;;  %s1538_s1 = inlined_call_operand.vmem [shape: f32[8,1,8], index: 1, kind: input, shape index: {}]   ;;  %s1539_s2 = inlined_call_operand.vmem [shape: f32[64,128], index: 2, kind: input, shape index: {}]   ;;  %s1540_s3 = inlined_call_operand.hbm [shape: f32[8,8,64], index: 3, kind: output, shape index: {}]  }
   0x1   :  { %10 = vsyncpa [#allocation3 + $0x1], 0  ;;  %s1341_s12 = smov 0   ;;  %s1343_s13 = smov 0  }
   0x2   :  { %s1345_s14 = smov 0   ;;  %s1347_s15 = smov 0  }
   0x3 LB: > { %s1362_s16 = sadd.s32 4294967295, %s1312_s15   ;;  %s1071_s17 = sadd.s32 4294967294, %s1312_s15   ;;  %s1312_s15 = sphi %s1347_s15, %s1546_s15   ;;  %s1308_s14 = sphi %s1345_s14, %s1545_s14   ;;  %s1304_s13 = sphi %s1343_s13, %s1544_s13   ;;  %s1300_s12 = sphi %s1341_s12, %s1543_s12  }
   0x4   : > { %s1366_s18 = sadd.s32 1, %s1312_s15   ;;  %s96_s19 = sadd.s32 1, %s1308_s14 }
   0x5   : > { %s93_s20 = ssub.s32 %s1312_s15, %s1366_s18  ;;  %p106_p0 = scmp.ne.s32.totalorder %s1308_s14, %s1304_s13 }
   0x6   : > { %p94_p1 = scmp.eq.s32.totalorder %s93_s20, 0  ;;  %p107_p2 = scmp.eq.s32.totalorder %s1362_s16, 1 }
   0x7   : > { %p112_p3 = scmp.ne.s32.totalorder %s1304_s13, %s1300_s12  ;;  %p113_p4 = scmp.eq.s32.totalorder %s1071_s17, 1 }
   0x8   : > { %s1377_s21 = scalar_select %p94_p1, %s1308_s14, %s96_s19  }
   0x9   : > { %p1379_p5 = por %p107_p2, %p106_p0  ;;  %p1383_p6 = por %p113_p4, %p112_p3 }
   0xa   : > { %p1074_p7 = scmp.ge.s32.totalorder %s1312_s15, 1  ;;  %p151_p8 = scmp.lt.s32.totalorder %s1312_s15, 3 }
   0xc   : > { %p152_p9 = pnand %p1074_p7, %p151_p8 }
   0xd   : > { %s1076_s28 = sshll.u32 (!%p152_p9), %s1362_s16, 2  ;;  %s1316_s27 = smov (!%p152_p9), 64  }
   0xe   : > { %155 = sbr.rel (%p152_p9) target bundleno = 921 (0x399), region = 32  ;;  %p180_p10 = scmp.lt.s32.totalorder (!%p152_p9), %s1076_s28, 7 }
   0xf   : > { %s1100_s8 = sshll.u32 (!%p152_p9), %s1362_s16, 9  ;;  %s1318_s19 = smov (!%p152_p9), [#allocation2]  }
  0x10   : > { %s1256_s20 = sshll.u32 (!%p152_p9), %s1318_s19, 4  ;;  %s1257_s20 = int_to_ptr.vmem [resolvable:$false] %s1256_s20 }
  0x11   : > { %s1258_s24 = scalar_lea.vmem (!%p152_p9), %s1257_s20, 1024 }
  0x13   : > { %v202_v0 = vld [vmem:[%s1539_s2 + $0x38] sm:$0xff]  ;;  %v201_v1 = vld [vmem:[%s1539_s2 + $0x30] sm:$0xff]  ;;  %v200_v2 = vld [vmem:[%s1539_s2 + $0x28] sm:$0xff]  ;;  %s1548_s28 = smov (!%p180_p10, %s1076_s28), 7  ;;  %vm203_vm0 = vcmask 523264   ;;  %v1314_v12 = vmov 0.0   ;;  %v621_v21 = vlaneseq }
  0x14   : > { %1129 = vmatprep.subr.mxu0 %v202_v0  ;;  %v199_v3 = vld [vmem:[%s1539_s2 + $0x20] sm:$0xff]  ;;  %s1077_s6 = sshll.u32 %s1548_s28, 3  ;;  %v198_v4 = vld [vmem:[%s1539_s2 + $0x18] sm:$0xff]  ;;  %v197_v6 = vld [vmem:[%s1539_s2 + $0x10] sm:$0xff]  ;;  %1151 = vmatprep.subr.mxu1 %v1314_v12  ;;  %vm1315_vm1 = vmmov 0   ;;  %s188_s4 = scalar_lea.vmem %s1538_s1, %s1548_s28  ;;  %v1317_v26 = vmov 0  }
  0x15   : > { %1130 = vmatpush3.msra.mxu0 %v202_v0  ;;  %s183_s11 = scalar_lea.vmem %s1537_s0, %s1077_s6  ;;  %v196_v7 = vld [vmem:[%s1539_s2 + $0x8] sm:$0xff]  ;;  %v195_v8 = vld [vmem:[%s1539_s2] sm:$0xff]  ;;  %1153 = vmatprep.mubr.msk.f32.mxu1 %vm1315_vm1, %v1314_v12  ;;  %v622_v23 = vshrl.u32 %v621_v21, 7  ;;  %vm645_vm6 = vcmask 64512   ;;  %s176_s28 = sand.u32 1, %s1304_s13  }
  0x16   : > { %1131 = vmatprep.subr.mxu0 %v201_v1  ;;  %v191_v5 = vld [vmem:[%s183_s11] sm:$0xff]  ;;  %v192_v9 = vld [vmem:[%s183_s11 + $0x8] sm:$0xff]  ;;  %v1421_v10 = vld [vmem:[%s183_s11 + $0x10] sm:$0xff]  ;;  %s1075_s5 = sshll.u32 %s176_s28, 5  ;;  %s1497_s16 = scalar_lea.sflag [#allocation3], %s176_s28 }
  0x17   : > { %1132 = vmatpush3.msra.mxu0 %v201_v1  ;;  %1145 = vmatprep.mubr.msk.f32.mxu0 %vm203_vm0, %v191_v5  ;;  %v1426_v11 = vld [vmem:[%s183_s11 + $0x18] sm:$0xff]  ;;  %v301_v22 = vld [vmem:[%s188_s4] sm:$0x1]  ;;  %v302_v24 = vld [vmem:[%s188_s4 + $0x1] sm:$0x1]  ;;  %v623_v25 = vsub.s32 0, %v622_v23  ;;  %s1492_s11 = scalar_lea.hbm %s1540_s3, %s1100_s8 }
  0x18   : > { %1133 = vmatprep.subr.mxu0 %v200_v2  ;;  %vm305_vm2 = vcmp.gt.f32.partialorder %v301_v22, 0.5  ;;  %vm306_vm3 = vcmp.gt.f32.partialorder %v302_v24, 0.5  ;;  %v303_v28 = vld [vmem:[%s188_s4 + $0x2] sm:$0x1]  ;;  %v304_v31 = vld [vmem:[%s188_s4 + $0x3] sm:$0x1] }
  0x19   : > { %1134 = vmatpush3.msra.mxu0 %v200_v2  ;;  %v617_v27 = vsel %vm305_vm2, 1, %v1317_v26  ;;  %v618_v30 = vsel %vm306_vm3, 1, %v1317_v26  ;;  %vm307_vm4 = vcmp.gt.f32.partialorder %v303_v28, 0.5  ;;  %vm308_vm7 = vcmp.gt.f32.partialorder %v304_v31, 0.5  ;;  %s178_s6 = scalar_lea.vmem [#allocation2], %s1075_s5 }
  0x1a   : > { %1135 = vmatprep.subr.mxu0 %v199_v3  ;;  %v624_v29 = vrot.slane %v617_v27, %v623_v25  ;;  %v628_v32 = vrot.slane %v618_v30, %v623_v25  ;;  %v619_v33 = vsel %vm307_vm4, 1, %v1317_v26  ;;  %v620_v39 = vsel %vm308_vm7, 1, %v1317_v26  ;;  %s1000_s7 = sshll.u32 %s178_s6, 4  ;;  %s1487_s7 = int_to_ptr.vmem [resolvable:$true] %s1000_s7 }
  0x1b   : > { %1136 = vmatpush3.msra.mxu0 %v199_v3  ;;  %v632_v38 = vrot.slane %v619_v33, %v623_v25  ;;  %v636_v44 = vrot.slane %v620_v39, %v623_v25  ;;  %s1252_s17 = scalar_lea.vmem %s1487_s7, 512  ;;  %p1259_p0 = scmp.lt.s32.totalorder %s1487_s7, %s1257_s20 }
  0x1c   : > { %1137 = vmatprep.subr.mxu0 %v198_v4  ;;  %vm637_vm5 = vcmp.eq.s32.totalorder %v624_v29, 1  ;;  %vm638_vm8 = vcmp.eq.s32.totalorder %v628_v32, 1  ;;  %p1253_p11 = scmp.ne.s32.totalorder %s1487_s7, %s1252_s17  ;;  %p1260_p1 = scmp.lt.s32.totalorder %s1258_s24, %s1252_s17 }
  0x1d   : > { %1138 = vmatpush3.msra.mxu0 %v198_v4  ;;  %vm639_vm9 = vcmp.eq.s32.totalorder %v632_v38, 1  ;;  %vm640_vm10 = vcmp.eq.s32.totalorder %v636_v44, 1 }
  0x1e   : > { %1139 = vmatprep.subr.mxu0 %v197_v6  ;;  %p1254_p12 = pnand %p1253_p11, %p1379_p5  ;;  %p1261_p2 = por %p1260_p1, %p1259_p0 }
  0x1f   : > { %1140 = vmatpush3.msra.mxu0 %v197_v6 }
  0x20   : > { %1141 = vmatprep.subr.mxu0 %v196_v7  ;;  %p1255_p13 = pneg %p1254_p12 }
  0x21   : > { %1142 = vmatpush3.msra.mxu0 %v196_v7 }
  0x22   : > { %1143 = vmatprep.subr.mxu0 %v195_v8  ;;  %p1262_p3 = pnand %p1261_p2, %p1255_p13 }
  0x23   : > { %1144 = vmatpush3.msra.mxu0 %v195_v8 }
  0x24   : > { %1146 = vmatmul.mubr.msk.f32.vlgmr.msra.gmra.mxu0 %vm203_vm0, %v192_v9  ;;  %1176 = vmatprep.subr.mxu0 %v1314_v12 }
  0x25   : > { %1148 = vmatprep.mubr.msk.f32.mxu0 %vm203_vm0, %v1421_v10  ;;  %1177 = vmatpush3.msra.mxu0 %v192_v9 }
  0x26   : > { %1186 = vmatprep.subr.mxu0 %v1314_v12 }
  0x28   : > { %1149 = vmatmul.mubr.msk.f32.gmra.mxu0 %vm203_vm0, %v1426_v11 }
  0x29   : > { %1178 = vmatprep.mubr.msk.f32.mxu0 %vm1315_vm1, %v1314_v12 }
  0xe4   : > { %v1147_v13 = vpop.f32.mrf.mxu0 }
  0xe6   : > { %v282_v14 = vpop.f32.mrf.mxu0 }
  0xe7   : > { %310 = vrot.lane.b32.xlu0 %v282_v14, %s1316_s27 }
  0xe8   : > { %v1150_v15 = vpop.f32.mrf.mxu0 }
  0xea   : > { %v292_v16 = vpop.f32.mrf.mxu0 }
  0xeb   : > { %387 = vrot.lane.b32.xlu0 %v1147_v13, %s1316_s27  ;;  %464 = vrot.lane.b32.xlu1 %v292_v16, %s1316_s27 }
  0xef   : > { %541 = vrot.lane.b32.xlu1 %v1150_v15, %s1316_s27 }
 0x159   : > { %v311_v17 = vpop.permute.xlu0 %310 }
 0x15a   : > { %1152 = vmatpush3.xpose.msk.msra.mxu1 %vm203_vm0, %v311_v17 }
 0x15b   : > { %1156 = vmatprep.subr.mxu1 %v1314_v12 }
 0x15d   : > { %1154 = vmatmul.mubr.msk.f32.vlgmr.msra.gmra.mxu1 %vm203_vm0, %v282_v14  ;;  %v388_v18 = vpop.permute.xlu0 %387  ;;  %v465_v19 = vpop.permute.xlu1 %464 }
 0x15e   : > { %1157 = vmatpush3.xpose.msk.msra.mxu1 %vm203_vm0, %v388_v18  ;;  %1158 = vmatprep.mubr.msk.f32.mxu1 %vm1315_vm1, %v1314_v12 }
 0x15f   : > { %1161 = vmatprep.subr.mxu1 %v1314_v12 }
 0x161   : > { %1159 = vmatmul.mubr.msk.f32.vlgmr.msra.gmra.mxu1 %vm203_vm0, %v1147_v13  ;;  %v542_v20 = vpop.permute.xlu1 %541 }
 0x162   : > { %1162 = vmatpush3.xpose.msk.msra.mxu1 %vm203_vm0, %v465_v19  ;;  %1163 = vmatprep.mubr.msk.f32.mxu1 %vm1315_vm1, %v1314_v12 }
 0x163   : > { %1166 = vmatprep.subr.mxu1 %v1314_v12 }
 0x165   : > { %1164 = vmatmul.mubr.msk.f32.vlgmr.msra.gmra.mxu1 %vm203_vm0, %v292_v16 }
 0x166   : > { %1167 = vmatpush3.xpose.msk.msra.mxu1 %vm203_vm0, %v542_v20  ;;  %1168 = vmatprep.mubr.msk.f32.mxu1 %vm1315_vm1, %v1314_v12 }
 0x167   : > { %1171 = vmatprep.subr.mxu1 %v1314_v12 }
 0x169   : > { %1169 = vmatmul.mubr.msk.f32.vlgmr.msra.gmra.mxu1 %vm203_vm0, %v1150_v15 }
 0x16a   : > { %1172 = vmatpush3.msra.mxu1 %v191_v5  ;;  %1173 = vmatprep.mubr.msk.f32.mxu1 %vm1315_vm1, %v1314_v12 }
 0x16b   : > { %1181 = vmatprep.subr.mxu1 %v1314_v12 }
 0x21d   : > { %v382_v34 = vpop.f32.mrf.mxu1 }
 0x21e   : > { %v641_v35 = vsel %vm637_vm5, -1e+09, %v382_v34 }
 0x21f   : > { %v1155_v36 = vpop.f32.mrf.mxu1  ;;  %v646_v37 = vsel %vm645_vm6, %v641_v35, -inf }
 0x220   : > { %647 = vmax.xlane.f32.xlu0 %v646_v37 }
 0x221   : > { %v459_v40 = vpop.f32.mrf.mxu1 }
 0x222   : > { %v642_v41 = vsel %vm638_vm8, -1e+09, %v459_v40 }
 0x223   : > { %v1160_v42 = vpop.f32.mrf.mxu1  ;;  %v649_v43 = vsel %vm645_vm6, %v642_v41, -inf }
 0x224   : > { %650 = vmax.xlane.f32.xlu1 %v649_v43 }
 0x225   : > { %v536_v45 = vpop.f32.mrf.mxu1 }
 0x226   : > { %v643_v46 = vsel %vm639_vm9, -1e+09, %v536_v45 }
 0x227   : > { %v1165_v47 = vpop.f32.mrf.mxu1  ;;  %v652_v48 = vsel %vm645_vm6, %v643_v46, -inf }
 0x228   : > { %653 = vmax.xlane.f32.xlu0 %v652_v48 }
 0x229   : > { %v613_v49 = vpop.f32.mrf.mxu1 }
 0x22a   : > { %v644_v50 = vsel %vm640_vm10, -1e+09, %v613_v49 }
 0x22b   : > { %v1170_v51 = vpop.f32.mrf.mxu1  ;;  %v655_v52 = vsel %vm645_vm6, %v644_v50, -inf }
 0x22c   : > { %656 = vmax.xlane.f32.xlu0 %v655_v52 }
 0x2a9   : > { %v648_v53 = vpop.xlane.xlu0 %647 }
 0x2aa   : > { %v658_v54 = vsub.f32 %v641_v35, %v648_v53 }
 0x2ac   : > { %v662_v55 = vmul.f32 1.442695, %v658_v54 }
 0x2ad   : > { %v651_v56 = vpop.xlane.xlu1 %650 }
 0x2ae   : > { %1236 = vpow2.f32 %v662_v55  ;;  %v659_v57 = vsub.f32 %v642_v41, %v651_v56 }
 0x2b0   : > { %v664_v58 = vmul.f32 1.442695, %v659_v57 }
 0x2b1   : > { %v654_v59 = vpop.xlane.xlu0 %653 }
 0x2b2   : > { %1238 = vpow2.f32 %v664_v58  ;;  %v660_v60 = vsub.f32 %v643_v46, %v654_v59 }
 0x2b4   : > { %v666_v61 = vmul.f32 1.442695, %v660_v60 }
 0x2b5   : > { %v657_v62 = vpop.xlane.xlu0 %656 }
 0x2b6   : > { %1240 = vpow2.f32 %v666_v61  ;;  %v661_v63 = vsub.f32 %v644_v50, %v657_v62 }
 0x2b8   : > { %v668_v0 = vmul.f32 1.442695, %v661_v63 }
 0x2ba   : > { %1242 = vpow2.f32 %v668_v0 }
 0x2bb   : > { %v1237_v1 = vpop.eup %1236 }
 0x2bc   : > { %1174 = vmatmul.mubr.msk.f32.vlgmr.msra.gmra.mxu1 %vm645_vm6, %v1237_v1  ;;  %v670_v2 = vsel %vm645_vm6, %v1237_v1, 0.0 }
 0x2bd   : > { %671 = vadd.xlane.f32.xlu1 %v670_v2  ;;  %1182 = vmatpush3.msra.mxu1 %v1421_v10 }
 0x2be   : > { %1183 = vmatprep.mubr.msk.f32.mxu1 %vm1315_vm1, %v1314_v12 }
 0x2bf   : > { %v1239_v3 = vpop.eup %1238 }
 0x2c0   : > { %1179 = vmatmul.mubr.msk.f32.vlgmr.msra.gmra.mxu0 %vm645_vm6, %v1239_v3  ;;  %v673_v4 = vsel %vm645_vm6, %v1239_v3, 0.0 }
 0x2c1   : > { %674 = vadd.xlane.f32.xlu0 %v673_v4  ;;  %1187 = vmatpush3.msra.mxu0 %v1426_v11 }
 0x2c2   : > { %1188 = vmatprep.mubr.msk.f32.mxu0 %vm1315_vm1, %v1314_v12 }
 0x2c3   : > { %v1241_v5 = vpop.eup %1240 }
 0x2c4   : > { %1184 = vmatmul.mubr.msk.f32.vlgmr.msra.gmra.mxu1 %vm645_vm6, %v1241_v5  ;;  %v676_v6 = vsel %vm645_vm6, %v1241_v5, 0.0 }
 0x2c5   : > { %677 = vadd.xlane.f32.xlu1 %v676_v6 }
 0x2c7   : > { %v1243_v7 = vpop.eup %1242 }
 0x2c8   : > { %1189 = vmatmul.mubr.msk.f32.vlgmr.msra.gmra.mxu0 %vm645_vm6, %v1243_v7  ;;  %v679_v8 = vsel %vm645_vm6, %v1243_v7, 0.0 }
 0x2c9   : > { %680 = vadd.xlane.f32.xlu0 %v679_v8 }
 0x346   : > { %v672_v9 = vpop.xlane.xlu1 %671 }
 0x347   : > { %1244 = vrcp.f32 %v672_v9 }
 0x34a   : > { %v675_v10 = vpop.xlane.xlu0 %674 }
 0x34b   : > { %1246 = vrcp.f32 %v675_v10 }
 0x34e   : > { %v678_v11 = vpop.xlane.xlu1 %677 }
 0x34f   : > { %1248 = vrcp.f32 %v678_v11 }
 0x352   : > { %v681_v12 = vpop.xlane.xlu0 %680 }
 0x353   : > { %1250 = vrcp.f32 %v681_v12 }
 0x354   : > { %v1245_v13 = vpop.eup %1244 }
 0x358   : > { %v1247_v17 = vpop.eup %1246 }
 0x35c   : > { %v1249_v21 = vpop.eup %1248 }
 0x360   : > { %v1251_v25 = vpop.eup %1250 }
 0x37c   : > { %v751_v14 = vpop.f32.mrf.mxu1 }
 0x37d   : > { %v978_v15 = vmul.f32 %v1245_v13, %v751_v14 }
 0x37e   : > { %v1175_v16 = vpop.f32.mrf.mxu1 }
 0x37f   : > { %982 = vst.msk [vmem:[%s178_s6] sm:$0xff] %vm203_vm0, %v978_v15 }
 0x380   : > { %v824_v18 = vpop.f32.mrf.mxu0 }
 0x381   : > { %v979_v19 = vmul.f32 %v1247_v17, %v824_v18 }
 0x382   : > { %v1180_v20 = vpop.f32.mrf.mxu0 }
 0x383   : > { %983 = vst.msk [vmem:[%s178_s6 + $0x8] sm:$0xff] %vm203_vm0, %v979_v19 }
 0x384   : > { %v897_v22 = vpop.f32.mrf.mxu1 }
 0x385   : > { %v980_v23 = vmul.f32 %v1249_v21, %v897_v22 }
 0x386   : > { %v1185_v24 = vpop.f32.mrf.mxu1 }
 0x387   : > { %984 = vst.msk [vmem:[%s178_s6 + $0x10] sm:$0xff] %vm203_vm0, %v980_v23 }
 0x388   : > { %v970_v26 = vpop.f32.mrf.mxu0 }
 0x389   : > { %v981_v27 = vmul.f32 %v1251_v25, %v970_v26 }
 0x38a   : > { %v1190_v28 = vpop.f32.mrf.mxu0 }
 0x38b   : > { %985 = vst.msk [vmem:[%s178_s6 + $0x18] sm:$0xff] %vm203_vm0, %v981_v27 }
 0x38c   : > { %1265 = shalt.err (!%p1262_p3)
}
 0x38d   : > { %s1266_s25 = scalar_lea.hbm %s1492_s11, 512  ;;  %s1270_s29 = scalar_lea.hbm %s1540_s3, 1024 }
 0x38e   : > { %p1267_p4 = scmp.ne.s32.totalorder %s1492_s11, %s1266_s25  ;;  %p1271_p9 = scmp.lt.s32.totalorder %s1492_s11, %s1540_s3 }
 0x38f   : > { %p1272_p10 = scmp.lt.s32.totalorder %s1270_s29, %s1266_s25 }
 0x390   : > { %p1268_p7 = pnand %p1267_p4, %p1379_p5 }
 0x391   : > { %p1273_p11 = por %p1272_p10, %p1271_p9 }
 0x392   : > { %p1269_p8 = pneg %p1268_p7 }
 0x394   : > { %p1274_p12 = pnand %p1273_p11, %p1269_p8 }
 0x396   : > { %1277 = shalt.err (!%p1274_p12)
}
 0x397   : > { %s1319_s28 = smov 128   ;;  %s1320_s5 = smov 8  }
 0x398   : > { %1191 = dma.vmem_to_hbm [thread:$0]  (%p1379_p5), %s1487_s7, 512, %s1492_s11, %s1497_s16, %s1319_s28, %s1319_s28, %s1320_s5  }
 0x399 PF: > { %p1197_p13 = scmp.ge.s32.totalorder %s1312_s15, 2  ;;  %s1015_s6 = sand.u32 1, %s1300_s12  }
 0x39a   : > { %s1016_s8 = scalar_lea.sflag [#allocation3], %s1015_s6 }
 0x39b   : > { %p1194_p0 = pnand %p1197_p13, %p1383_p6 }
 0x39d   : > { %p1195_p1 = pneg %p1194_p0 }
 0x39f   : > { %1295 = dma.done.wait (%p1195_p1), %s1016_s8, 512  }
 0x3a0   : > { %1297 = vsyncadd (%p1195_p1), %s1016_s8, 4294966784  ;;  %p13_p2 = scmp.ge.s32.totalorder %s1366_s18, 4   ;;  %s1543_s12 = smov %s1304_s13 }
 0x3a1   : > { %s1544_s13 = smov %s1308_s14  ;;  %s1545_s14 = smov %s1377_s21 }
 0x3a2   : > { %s1546_s15 = smov %s1366_s18  ;;  %15 = sbr.rel (!%p13_p2) target bundleno = 3 (0x3), region = 70 }
 0x3a7   :  { %1021 = vsyncpa [#allocation3], 1 }
 0x3a8   :  { %1023 = vsyncpa [#allocation3 + $0x1], 1 }

</bundles_post_ra>
